<compile_context>
chip_gen: v5e
topology: v5e:2x2
jax: 0.10.0
libtpu: 0.0.40
codegen_flags: <defaults>
</compile_context>

<pallas_src>
import jax
import jax.numpy as jnp
from jax.experimental import pallas as pl
from jax.experimental.pallas import tpu as pltpu


def transfr_kernel(text_ref, w1_ref, b1_ref, w2_ref, b2_ref, user_ref, out_ref):
    # text_ref: (TILE_M, D0) f32 streamed tile   w1_ref: (D0, D1) bf16   b1_ref: (1, D1) f32
    # w2_ref:   (D1, D2) f32                     b2_ref: (1, D2) f32     user_ref: (1, D2) f32
    # out_ref:  (1, TILE_M) f32
    #
    # Cast the streamed f32 tile to bf16 in-kernel (VPU) right before the MXU dot;
    # avoids a separate wrapper-side cast pass over HBM.
    x = text_ref[...].astype(w1_ref.dtype)
    # Adapter layer 1: Linear + ReLU (bf16 operands, f32 MXU accumulate; elementwise f32).
    h = jnp.dot(x, w1_ref[...], preferred_element_type=jnp.float32)
    h = jnp.maximum(h + b1_ref[...], 0.0)
    # Adapter layer 2: Linear + ReLU, kept fully in f32 (D1=64, D2=16 are tiny; the kernel
    # is HBM-bound, so this costs nothing and matches the PyTorch f32 semantics closely).
    h = jnp.dot(h, w2_ref[...], preferred_element_type=jnp.float32)
    items_emb = jnp.maximum(h + b2_ref[...], 0.0)
    # CommonModule (implicit): rating[m] = sigmoid(sum_k user[0,k] * items_emb[m,k]),
    # expressed as an MXU contraction over D2 producing a lane-dense (1, TILE_M) row.
    # (D2=16: any inserted transpose on the rhs is tiny and off the roofline.)
    rating = jax.lax.dot_general(
        user_ref[...], items_emb,
        dimension_numbers=(((1,), (1,)), ((), ())),
        preferred_element_type=jnp.float32)
    out_ref[...] = jax.nn.sigmoid(rating)


def transfr_forward(text_embs, w1, b1, w2, b2, user_emb, *, tile_m=2048):
    """text_embs: (N, D0) synthetic BERT pooler output (f32), streamed as-is.
       w1: (D0, D1), b1: (1, D1), w2: (D1, D2), b2: (1, D2), user_emb: (1, D2).
       Returns rating: (N,) float32."""
    n_items, d0 = text_embs.shape
    d1 = w1.shape[1]
    d2 = w2.shape[1]

    def round_up(x, m):
        return (x + m - 1) // m * m

    # Item tile: multiple of 128 rows (sublane-aligned input, lane-dense output),
    # never larger than the 128-rounded problem size.
    tile = min(round_up(tile_m, 128), round_up(n_items, 128))
    # Keep at least 2 grid steps when the problem allows so dimension_semantics
    # ("parallel",) can split the item axis across both TensorCores on v7x.
    if n_items > 128:
        tile = min(tile, round_up(-(-n_items // 2), 128))
    num_tiles = -(-n_items // tile)

    # Resident parameters: w1 in bf16 (matmul operand), everything else in f32.
    w1c = w1.astype(jnp.bfloat16)
    b1f = b1.astype(jnp.float32)
    w2f = w2.astype(jnp.float32)
    b2f = b2.astype(jnp.float32)
    userf = user_emb.astype(jnp.float32)

    # Explicit scoped-VMEM budget: double-buffered streamed text tile + (conservatively
    # double-counted) resident params + double-buffered output row, plus headroom.
    itemsize_text = jnp.dtype(text_embs.dtype).itemsize
    vmem_needed = (
        2 * tile * d0 * itemsize_text                     # streamed text tiles
        + 2 * (d0 * d1 * 2)                               # w1 (bf16)
        + 2 * (d1 * d2 * 4 + d1 * 4 + 2 * d2 * 4)         # w2, b1, b2, user (f32)
        + 2 * tile * 4                                    # (1, tile) f32 output rows
    )
    vmem_limit = int(max(vmem_needed + (8 << 20), 16 << 20))

    out = pl.pallas_call(
        transfr_kernel,
        out_shape=jax.ShapeDtypeStruct((1, n_items), jnp.float32),
        grid_spec=pltpu.PrefetchScalarGridSpec(
            num_scalar_prefetch=0,
            grid=(num_tiles,),
            in_specs=[
                pl.BlockSpec((tile, d0), lambda i: (i, 0)),   # streamed item tiles (f32)
                pl.BlockSpec((d0, d1), lambda i: (0, 0)),     # resident weights
                pl.BlockSpec((1, d1), lambda i: (0, 0)),
                pl.BlockSpec((d1, d2), lambda i: (0, 0)),
                pl.BlockSpec((1, d2), lambda i: (0, 0)),
                pl.BlockSpec((1, d2), lambda i: (0, 0)),
            ],
            out_specs=pl.BlockSpec((1, tile), lambda i: (0, i)),
        ),
        compiler_params=pltpu.CompilerParams(
            dimension_semantics=("parallel",),
            vmem_limit_bytes=vmem_limit),
    )(text_embs, w1c, b1f, w2f, b2f, userf)

    return out[0]


def reference_forward(text_embs, w1, b1, w2, b2, user_emb):
    # Pure-f32 semantics of the original PyTorch module.
    h = jnp.maximum(text_embs @ w1 + b1, 0.0)
    items_emb = jnp.maximum(h @ w2 + b2, 0.0)
    return jax.nn.sigmoid(jnp.sum(items_emb * user_emb, axis=1))


def reference_forward_mixed(text_embs, w1, b1, w2, b2, user_emb):
    # Mirrors the kernel's precision recipe (bf16 layer-1 operands, f32 everywhere else).
    h = jnp.dot(text_embs.astype(jnp.bfloat16), w1.astype(jnp.bfloat16),
                preferred_element_type=jnp.float32)
    h = jnp.maximum(h + b1, 0.0)
    items_emb = jnp.maximum(h @ w2 + b2, 0.0)
    return jax.nn.sigmoid(jnp.sum(items_emb * user_emb, axis=1))


if __name__ == "__main__":
    # Small, deterministic synthetic setup consistent with the module's shapes.
    # configs: layers=[32, 64, 16], latent_dim=16, data_type='implicit'
    # TODO(synk): BertTokenizer / BertModel ('models/federated/DistBERT') cannot be loaded
    #             here; their pooler output is replaced by a deterministic dense tensor.
    n_items = 300        # number of item texts (exercises 2 tiles + ragged last tile)
    d_bert = 32          # synthetic BERT pooler dim (stands in for 768)
    d_hidden = 64
    latent_dim = 16      # configs['latent_dim'] == configs['layers'][-1]

    key = jax.random.PRNGKey(0)
    k_text, k_w1, k_b1, k_w2, k_b2, k_user = jax.random.split(key, 6)

    text_embs = jax.random.normal(k_text, (n_items, d_bert), dtype=jnp.float32)

    # Adapter params (PyTorch Linear init U(-1/sqrt(fan_in), 1/sqrt(fan_in)),
    # stored as (in, out) so the kernel computes x @ W).
    lim1 = 1.0 / jnp.sqrt(jnp.float32(d_bert))
    w1 = jax.random.uniform(k_w1, (d_bert, d_hidden), jnp.float32, -lim1, lim1)
    b1 = jax.random.uniform(k_b1, (1, d_hidden), jnp.float32, -lim1, lim1)
    lim2 = 1.0 / jnp.sqrt(jnp.float32(d_hidden))
    w2 = jax.random.uniform(k_w2, (d_hidden, latent_dim), jnp.float32, -lim2, lim2)
    b2 = jax.random.uniform(k_b2, (1, latent_dim), jnp.float32, -lim2, lim2)

    # UserModule: Embedding(1, latent_dim) initialized with torch.rand -> U[0, 1)
    user_emb = jax.random.uniform(k_user, (1, latent_dim), jnp.float32, 0.0, 1.0)

    rating = transfr_forward(text_embs, w1, b1, w2, b2, user_emb)
    jax.block_until_ready(rating)
    assert rating.shape == (n_items,)
    assert bool(jnp.all(jnp.isfinite(rating)))

    # Tight check against a reference using the same mixed-precision recipe.
    ref_mixed = reference_forward_mixed(text_embs, w1, b1, w2, b2, user_emb)
    assert jnp.allclose(rating, ref_mixed, atol=5e-3, rtol=5e-3)

    # Semantic check against the pure-f32 module forward (bf16 layer 1 => looser tol).
    ref_f32 = reference_forward(text_embs, w1, b1, w2, b2, user_emb)
    assert jnp.allclose(rating, ref_f32, atol=2e-2, rtol=2e-2)

    print("KERNEL_OK")
</pallas_src>

<mosaic_0001>
module attributes {stable_mosaic.version = 11 : i64} {
  func.func @transfr_kernel(%arg0: i32, %arg1: memref<256x32xf32, #tpu.memory_space<vmem>>, %arg2: memref<32x64xbf16, #tpu.memory_space<vmem>>, %arg3: memref<1x64xf32, #tpu.memory_space<vmem>>, %arg4: memref<64x16xf32, #tpu.memory_space<vmem>>, %arg5: memref<1x16xf32, #tpu.memory_space<vmem>>, %arg6: memref<1x16xf32, #tpu.memory_space<vmem>>, %arg7: memref<1x256xf32, #tpu.memory_space<vmem>>) attributes {dimension_semantics = [#tpu.dimension_semantics<parallel>], iteration_bounds = array<i64: 2>, scalar_prefetch = 0 : i64, scratch_operands = 0 : i64, tpu.core_type = #tpu.core_type<tc>, window_params = [{transform_indices = @transform_0, window_bounds = array<i64: 256, 32>}, {pipeline_mode = #tpu.pipeline_mode<synchronous>, transform_indices = @transform_1, window_bounds = array<i64: 32, 64>}, {pipeline_mode = #tpu.pipeline_mode<synchronous>, transform_indices = @transform_2, window_bounds = array<i64: 1, 64>}, {pipeline_mode = #tpu.pipeline_mode<synchronous>, transform_indices = @transform_3, window_bounds = array<i64: 64, 16>}, {pipeline_mode = #tpu.pipeline_mode<synchronous>, transform_indices = @transform_4, window_bounds = array<i64: 1, 16>}, {pipeline_mode = #tpu.pipeline_mode<synchronous>, transform_indices = @transform_5, window_bounds = array<i64: 1, 16>}, {transform_indices = @transform_6, window_bounds = array<i64: 1, 256>}]} {
    %c0 = arith.constant 0 : index
    %c0_0 = arith.constant 0 : index
    %0 = vector.load %arg1[%c0, %c0_0] : memref<256x32xf32, #tpu.memory_space<vmem>>, vector<256x32xf32>
    %1 = arith.truncf %0 : vector<256x32xf32> to vector<256x32xbf16>
    %c0_1 = arith.constant 0 : index
    %c0_2 = arith.constant 0 : index
    %2 = vector.load %arg2[%c0_1, %c0_2] : memref<32x64xbf16, #tpu.memory_space<vmem>>, vector<32x64xbf16>
    %cst = arith.constant dense<0.000000e+00> : vector<256x64xf32>
    %3 = tpu.matmul %1, %2, %cst {dimension_numbers = #tpu.dot_dimension_numbers<[1], [0], [0], [1], [0, 0, 1, 1], [], []>} : vector<256x32xbf16>, vector<32x64xbf16>, vector<256x64xf32> -> vector<256x64xf32>
    %c0_3 = arith.constant 0 : index
    %c0_4 = arith.constant 0 : index
    %4 = vector.load %arg3[%c0_3, %c0_4] : memref<1x64xf32, #tpu.memory_space<vmem>>, vector<1x64xf32>
    %5 = vector.broadcast %4 : vector<1x64xf32> to vector<256x64xf32>
    %6 = arith.addf %3, %5 : vector<256x64xf32>
    %cst_5 = arith.constant 0.000000e+00 : f32
    %7 = vector.broadcast %cst_5 : f32 to vector<256x64xf32>
    %8 = arith.maximumf %6, %7 : vector<256x64xf32>
    %c0_6 = arith.constant 0 : index
    %c0_7 = arith.constant 0 : index
    %9 = vector.load %arg4[%c0_6, %c0_7] : memref<64x16xf32, #tpu.memory_space<vmem>>, vector<64x16xf32>
    %cst_8 = arith.constant dense<0.000000e+00> : vector<256x16xf32>
    %10 = tpu.matmul %8, %9, %cst_8 {dimension_numbers = #tpu.dot_dimension_numbers<[1], [0], [0], [1], [0, 0, 1, 1], [], []>} : vector<256x64xf32>, vector<64x16xf32>, vector<256x16xf32> -> vector<256x16xf32>
    %c0_9 = arith.constant 0 : index
    %c0_10 = arith.constant 0 : index
    %11 = vector.load %arg5[%c0_9, %c0_10] : memref<1x16xf32, #tpu.memory_space<vmem>>, vector<1x16xf32>
    %12 = vector.broadcast %11 : vector<1x16xf32> to vector<256x16xf32>
    %13 = arith.addf %10, %12 : vector<256x16xf32>
    %cst_11 = arith.constant 0.000000e+00 : f32
    %14 = vector.broadcast %cst_11 : f32 to vector<256x16xf32>
    %15 = arith.maximumf %13, %14 : vector<256x16xf32>
    %c0_12 = arith.constant 0 : index
    %c0_13 = arith.constant 0 : index
    %16 = vector.load %arg6[%c0_12, %c0_13] : memref<1x16xf32, #tpu.memory_space<vmem>>, vector<1x16xf32>
    %cst_14 = arith.constant dense<0.000000e+00> : vector<1x256xf32>
    %17 = tpu.matmul %16, %15, %cst_14 {dimension_numbers = #tpu.dot_dimension_numbers<[1], [1], [0], [0], [0, 0, 1, 0], [], []>} : vector<1x16xf32>, vector<256x16xf32>, vector<1x256xf32> -> vector<1x256xf32>
    %18 = arith.negf %17 : vector<1x256xf32>
    %19 = math.exp %18 : vector<1x256xf32>
    %cst_15 = arith.constant 1.000000e+00 : f32
    %20 = vector.broadcast %cst_15 : f32 to vector<1x256xf32>
    %21 = arith.addf %20, %19 : vector<1x256xf32>
    %22 = arith.divf %20, %21 : vector<1x256xf32>
    %c0_16 = arith.constant 0 : index
    %c0_17 = arith.constant 0 : index
    %23 = vector.load %arg7[%c0_16, %c0_17] : memref<1x256xf32, #tpu.memory_space<vmem>>, vector<1x256xf32>
    tpu.vector_store %arg7[%c0_16, %c0_17], %22 {strides = array<i32>} : memref<1x256xf32, #tpu.memory_space<vmem>>, vector<1x256xf32>,
    return
  }
  func.func @transform_0(%arg0: i32) -> (i32, i32) {
    %c0_i32 = arith.constant 0 : i32
    %c0_i32_0 = arith.constant 0 : i32
    return %arg0, %c0_i32 : i32, i32
  }
  func.func @transform_1(%arg0: i32) -> (i32, i32) {
    %c0_i32 = arith.constant 0 : i32
    %c0_i32_0 = arith.constant 0 : i32
    %c0_i32_1 = arith.constant 0 : i32
    return %c0_i32, %c0_i32_0 : i32, i32
  }
  func.func @transform_2(%arg0: i32) -> (i32, i32) {
    %c0_i32 = arith.constant 0 : i32
    %c0_i32_0 = arith.constant 0 : i32
    %c0_i32_1 = arith.constant 0 : i32
    return %c0_i32, %c0_i32_0 : i32, i32
  }
  func.func @transform_3(%arg0: i32) -> (i32, i32) {
    %c0_i32 = arith.constant 0 : i32
    %c0_i32_0 = arith.constant 0 : i32
    %c0_i32_1 = arith.constant 0 : i32
    return %c0_i32, %c0_i32_0 : i32, i32
  }
  func.func @transform_4(%arg0: i32) -> (i32, i32) {
    %c0_i32 = arith.constant 0 : i32
    %c0_i32_0 = arith.constant 0 : i32
    %c0_i32_1 = arith.constant 0 : i32
    return %c0_i32, %c0_i32_0 : i32, i32
  }
  func.func @transform_5(%arg0: i32) -> (i32, i32) {
    %c0_i32 = arith.constant 0 : i32
    %c0_i32_0 = arith.constant 0 : i32
    %c0_i32_1 = arith.constant 0 : i32
    return %c0_i32, %c0_i32_0 : i32, i32
  }
  func.func @transform_6(%arg0: i32) -> (i32, i32) {
    %c0_i32 = arith.constant 0 : i32
    %c0_i32_0 = arith.constant 0 : i32
    return %c0_i32, %arg0 : i32, i32
  }
}

</mosaic_0001>

<bundles_post_ra>
// kernel: tpu_custom_call.1
= control target key start
LH: loop header
LB: loop body
LE: loop exit
PB: predicated region body
PF: predicated region fallthrough
CT: control target
= control target key end

     0   :  { %11 = vsyncpa [#allocation3], 0  ;;  %s1688_s0 = inlined_call_operand.vmem [shape: f32[300,32], index: 0, kind: input, shape index: {}]   ;;  %s1689_s1 = inlined_call_operand.vmem [shape: bf16[32,64], index: 1, kind: input, shape index: {}]   ;;  %s1690_s2 = inlined_call_operand.vmem [shape: f32[1,64], index: 2, kind: input, shape index: {}]   ;;  %s1691_s3 = inlined_call_operand.vmem [shape: f32[64,16], index: 3, kind: input, shape index: {}]   ;;  %s1692_s4 = inlined_call_operand.vmem [shape: f32[1,16], index: 4, kind: input, shape index: {}]   ;;  %s1693_s5 = inlined_call_operand.vmem [shape: f32[1,16], index: 5, kind: input, shape index: {}]   ;;  %s1694_s6 = inlined_call_operand.hbm [shape: f32[1,300], index: 6, kind: output, shape index: {}]  }
   0x1   :  { %13 = vsyncpa [#allocation3 + $0x1], 0  ;;  %s1314_s21 = smov 0   ;;  %s1316_s22 = smov 0  }
   0x2   :  { %s1318_s23 = smov 0   ;;  %s1320_s24 = smov 0  }
   0x3 LB: > { %s1335_s25 = sadd.s32 4294967295, %s1276_s24   ;;  %s1039_s26 = sadd.s32 4294967294, %s1276_s24   ;;  %s1276_s24 = sphi %s1320_s24, %s1700_s24   ;;  %s1272_s23 = sphi %s1318_s23, %s1699_s23   ;;  %s1268_s22 = sphi %s1316_s22, %s1698_s22   ;;  %s1264_s21 = sphi %s1314_s21, %s1697_s21  }
   0x4   : > { %s1339_s27 = sadd.s32 1, %s1276_s24   ;;  %s157_s28 = sadd.s32 1, %s1272_s23 }
   0x5   : > { %s154_s29 = ssub.s32 %s1276_s24, %s1339_s27  ;;  %p167_p0 = scmp.ne.s32.totalorder %s1272_s23, %s1268_s22 }
   0x6   : > { %p155_p1 = scmp.eq.s32.totalorder %s154_s29, 0  ;;  %p168_p2 = scmp.eq.s32.totalorder %s1335_s25, 1 }
   0x7   : > { %p173_p3 = scmp.ne.s32.totalorder %s1268_s22, %s1264_s21  ;;  %p174_p4 = scmp.eq.s32.totalorder %s1039_s26, 1 }
   0x8   : > { %s1350_s30 = scalar_select %p155_p1, %s1272_s23, %s157_s28  }
   0x9   : > { %p1352_p5 = por %p168_p2, %p167_p0  ;;  %p1356_p6 = por %p174_p4, %p173_p3 }
   0xa   : > { %p1042_p7 = scmp.ge.s32.totalorder %s1276_s24, 1  ;;  %p224_p8 = scmp.lt.s32.totalorder %s1276_s24, 3 }
   0xc   : > { %p225_p9 = pnand %p1042_p7, %p224_p8 }
   0xd   : > { %s1044_s11 = sshll.u32 (!%p225_p9), %s1335_s25, 5  ;;  %s255_s10 = sand.u32 (!%p225_p9), 1, %s1268_s22  }
   0xe   : > { %228 = sbr.rel (%p225_p9) target bundleno = 661 (0x295), region = 44  ;;  %p263_p10 = scmp.lt.s32.totalorder (!%p225_p9), %s1044_s11, 37 }
   0xf   : > { %s1633_s13 = scalar_lea.sflag (!%p225_p9), [#allocation3], %s255_s10 }
  0x13   : > { %v1144_v0 = vld [vmem:[%s1689_s1 + $0x8] sm:$0xff]  ;;  %v1143_v1 = vld [vmem:[%s1689_s1] sm:$0xff]  ;;  %s1702_s11 = smov (!%p263_p10, %s1044_s11), 37  ;;  %vm345_vm0 = vcmask 261120   ;;  %v522_v38 = vld [vmem:[%s1691_s3 + $0x38] sm:$0xff]  ;;  %vm527_vm1 = vcmask 523264  }
  0x14   : > { %400 = vmatpush.bf16.msra.mxu0 %v1144_v0  ;;  %1145 = vmatpush.bf16.msra.mxu3 %v1144_v0  ;;  %s1045_s14 = sshll.u32 %s1702_s11, 3  ;;  %v521_v39 = vld [vmem:[%s1691_s3 + $0x30] sm:$0xff]  ;;  %v520_v40 = vld [vmem:[%s1691_s3 + $0x28] sm:$0xff]  ;;  %v519_v41 = vld [vmem:[%s1691_s3 + $0x20] sm:$0xff]  ;;  %vm770_vm2 = vcmask 130048   ;;  %s1043_s11 = sshll.u32 %s255_s10, 1 }
  0x15   : > { %s1372_s17 = scalar_lea.vmem %s1688_s0, %s1045_s14  ;;  %632 = vmatpush.msra.mxu1 %v522_v38  ;;  %1147 = vmatpush.msra.mxu2 %v522_v38  ;;  %v518_v42 = vld [vmem:[%s1691_s3 + $0x18] sm:$0xff]  ;;  %v517_v49 = vld [vmem:[%s1691_s3 + $0x10] sm:$0xff]  ;;  %v516_v50 = vld [vmem:[%s1691_s3 + $0x8] sm:$0xff]  ;;  %vm951_vm10 = vcmask 1040384   ;;  %s257_s12 = scalar_lea.vmem [#allocation2], %s1043_s11 }
  0x16   : > { %v277_v2 = vld [vmem:[%s1372_s17] sm:$0xff]  ;;  %v278_v3 = vld [vmem:[%s1372_s17 + $0x8] sm:$0xff]  ;;  %v295_v4 = vld [vmem:[%s1372_s17 + $0x90] sm:$0xff]  ;;  %s1139_s14 = sshll.u32 (%p1352_p5), %s1335_s25, 1 }
  0x17   : > { %v309_v5 = vpack.c.bf16 %v278_v3, %v277_v2  ;;  %v296_v6 = vld [vmem:[%s1372_s17 + $0x98] sm:$0xff]  ;;  %v279_v8 = vld [vmem:[%s1372_s17 + $0x10] sm:$0xff]  ;;  %v297_v10 = vld [vmem:[%s1372_s17 + $0xa0] sm:$0xff]  ;;  %633 = vmatpush.msra.mxu1 %v521_v39  ;;  %1148 = vmatpush.msra.mxu2 %v521_v39  ;;  %s968_s15 = ssub.s32 (%p1352_p5), 3, %s1139_s14 }
  0x18   : > { %401 = vmatpush.bf16.msra.mxu0 %v1143_v1  ;;  %1146 = vmatpush.bf16.msra.mxu3 %v1143_v1  ;;  %v318_v7 = vpack.c.bf16 %v296_v6, %v295_v4  ;;  %v280_v9 = vld [vmem:[%s1372_s17 + $0x18] sm:$0xff]  ;;  %v298_v11 = vld [vmem:[%s1372_s17 + $0xa8] sm:$0xff]  ;;  %v281_v14 = vld [vmem:[%s1372_s17 + $0x20] sm:$0xff]  ;;  %p969_p11 = scmp.lt.s32.totalorder (%p1352_p5), %s968_s15, 2 }
  0x19   : > { %v310_v12 = vpack.c.bf16 %v280_v9, %v279_v8  ;;  %v319_v13 = vpack.c.bf16 %v298_v11, %v297_v10  ;;  %v282_v15 = vld [vmem:[%s1372_s17 + $0x28] sm:$0xff]  ;;  %v299_v16 = vld [vmem:[%s1372_s17 + $0xb0] sm:$0xff]  ;;  %v300_v17 = vld [vmem:[%s1372_s17 + $0xb8] sm:$0xff]  ;;  %634 = vmatpush.msra.mxu1 %v520_v40  ;;  %1149 = vmatpush.msra.mxu2 %v520_v40 }
  0x1a   : > { %v311_v18 = vpack.c.bf16 %v282_v15, %v281_v14  ;;  %v320_v19 = vpack.c.bf16 %v300_v17, %v299_v16  ;;  %v283_v20 = vld [vmem:[%s1372_s17 + $0x30] sm:$0xff]  ;;  %v284_v21 = vld [vmem:[%s1372_s17 + $0x38] sm:$0xff]  ;;  %v301_v22 = vld [vmem:[%s1372_s17 + $0xc0] sm:$0xff] }
  0x1b   : > { %1054 = vmatmul.msk.bf16.vlgmr.msra.gmra.mxu0 %vm345_vm0, %v309_v5  ;;  %1063 = vmatmul.msk.bf16.vlgmr.msra.gmra.mxu3 %vm345_vm0, %v318_v7  ;;  %v302_v23 = vld [vmem:[%s1372_s17 + $0xc8] sm:$0xff]  ;;  %v312_v24 = vpack.c.bf16 %v284_v21, %v283_v20  ;;  %v285_v26 = vld [vmem:[%s1372_s17 + $0x40] sm:$0xff]  ;;  %v303_v28 = vld [vmem:[%s1372_s17 + $0xd0] sm:$0xff] }
  0x1c   : > { %v321_v25 = vpack.c.bf16 %v302_v23, %v301_v22  ;;  %v286_v27 = vld [vmem:[%s1372_s17 + $0x48] sm:$0xff]  ;;  %v304_v29 = vld [vmem:[%s1372_s17 + $0xd8] sm:$0xff]  ;;  %v287_v32 = vld [vmem:[%s1372_s17 + $0x50] sm:$0xff]  ;;  %635 = vmatpush.msra.mxu1 %v519_v41  ;;  %1150 = vmatpush.msra.mxu2 %v519_v41 }
  0x1d   : > { %v313_v30 = vpack.c.bf16 %v286_v27, %v285_v26  ;;  %v322_v31 = vpack.c.bf16 %v304_v29, %v303_v28  ;;  %v288_v33 = vld [vmem:[%s1372_s17 + $0x58] sm:$0xff]  ;;  %v305_v34 = vld [vmem:[%s1372_s17 + $0xe0] sm:$0xff]  ;;  %v306_v35 = vld [vmem:[%s1372_s17 + $0xe8] sm:$0xff] }
  0x1e   : > { %v314_v36 = vpack.c.bf16 %v288_v33, %v287_v32  ;;  %v323_v37 = vpack.c.bf16 %v306_v35, %v305_v34  ;;  %v289_v43 = vld [vmem:[%s1372_s17 + $0x60] sm:$0xff]  ;;  %v290_v44 = vld [vmem:[%s1372_s17 + $0x68] sm:$0xff]  ;;  %636 = vmatpush.msra.mxu1 %v518_v42  ;;  %v307_v45 = vld [vmem:[%s1372_s17 + $0xf0] sm:$0xff]  ;;  %1151 = vmatpush.msra.mxu2 %v518_v42 }
  0x1f   : > { %v308_v46 = vld [vmem:[%s1372_s17 + $0xf8] sm:$0xff]  ;;  %v315_v47 = vpack.c.bf16 %v290_v44, %v289_v43  ;;  %v515_v51 = vld [vmem:[%s1691_s3] sm:$0xff]  ;;  %v291_v52 = vld [vmem:[%s1372_s17 + $0x70] sm:$0xff] }
  0x20   : > { %v324_v48 = vpack.c.bf16 %v308_v46, %v307_v45  ;;  %637 = vmatpush.msra.mxu1 %v517_v49  ;;  %1152 = vmatpush.msra.mxu2 %v517_v49  ;;  %v292_v53 = vld [vmem:[%s1372_s17 + $0x78] sm:$0xff]  ;;  %v1446_v55 = vld [vmem:[%s1690_s2] ss:$0 sm:$0xff]  ;;  %v294_v57 = vld [vmem:[%s1372_s17 + $0x88] sm:$0xff] }
  0x21   : > { %v316_v54 = vpack.c.bf16 %v292_v53, %v291_v52  ;;  %v293_v56 = vld [vmem:[%s1372_s17 + $0x80] sm:$0xff] }
  0x22   : > { %638 = vmatpush.msra.mxu1 %v516_v50  ;;  %1153 = vmatpush.msra.mxu2 %v516_v50  ;;  %v317_v59 = vpack.c.bf16 %v294_v57, %v293_v56 }
  0x24   : > { %639 = vmatpush.msra.mxu1 %v515_v51  ;;  %1154 = vmatpush.msra.mxu2 %v515_v51 }
  0x2b   : > { %1055 = vmatmul.msk.bf16.gmra.mxu0 %vm345_vm0, %v310_v12  ;;  %1064 = vmatmul.msk.bf16.gmra.mxu3 %vm345_vm0, %v319_v13 }
  0x3b   : > { %1056 = vmatmul.msk.bf16.gmra.mxu0 %vm345_vm0, %v311_v18  ;;  %1065 = vmatmul.msk.bf16.gmra.mxu3 %vm345_vm0, %v320_v19 }
  0x4b   : > { %1057 = vmatmul.msk.bf16.gmra.mxu0 %vm345_vm0, %v312_v24  ;;  %1066 = vmatmul.msk.bf16.gmra.mxu3 %vm345_vm0, %v321_v25 }
  0x5b   : > { %1058 = vmatmul.msk.bf16.gmra.mxu0 %vm345_vm0, %v313_v30  ;;  %1067 = vmatmul.msk.bf16.gmra.mxu3 %vm345_vm0, %v322_v31 }
  0x6b   : > { %1059 = vmatmul.msk.bf16.gmra.mxu0 %vm345_vm0, %v314_v36  ;;  %1068 = vmatmul.msk.bf16.gmra.mxu3 %vm345_vm0, %v323_v37 }
  0x7b   : > { %1060 = vmatmul.msk.bf16.gmra.mxu0 %vm345_vm0, %v315_v47  ;;  %1069 = vmatmul.msk.bf16.gmra.mxu3 %vm345_vm0, %v324_v48 }
  0x8b   : > { %1061 = vmatmul.msk.bf16.gmra.mxu0 %vm345_vm0, %v316_v54 }
  0x98   : > { %v403_v58 = vpop.f32.mrf.mxu0 }
  0x99   : > { %v404_v60 = vadd.f32 %v1446_v55, %v403_v58 }
  0x9b   : > { %v483_v61 = vmax.f32 %v404_v60, 0.0  ;;  %1062 = vmatmul.msk.bf16.gmra.mxu0 %vm345_vm0, %v317_v59 }
  0x9d   : > { %1070 = vmatmul.msk.f32.vlgmr.msra.gmra.mxu1 %vm527_vm1, %v483_v61 }
  0x9e   : > { %v448_v62 = vpop.f32.mrf.mxu3 }
  0x9f   : > { %v449_v63 = vadd.f32 %v1446_v55, %v448_v62 }
  0xa0   : > { %v405_v0 = vpop.f32.mrf.mxu0 }
  0xa1   : > { %v406_v1 = vadd.f32 %v1446_v55, %v405_v0  ;;  %v501_v2 = vmax.f32 %v449_v63, 0.0 }
  0xa3   : > { %v484_v3 = vmax.f32 %v406_v1, 0.0  ;;  %1088 = vmatmul.msk.f32.vlgmr.msra.gmra.mxu2 %vm527_vm1, %v501_v2 }
  0xa5   : > { %1071 = vmatmul.msk.f32.gmra.mxu1 %vm527_vm1, %v484_v3 }
  0xa6   : > { %v450_v4 = vpop.f32.mrf.mxu3 }
  0xa7   : > { %v451_v5 = vadd.f32 %v1446_v55, %v450_v4 }
  0xa8   : > { %v408_v6 = vpop.f32.mrf.mxu0 }
  0xa9   : > { %v409_v7 = vadd.f32 %v1446_v55, %v408_v6  ;;  %v502_v8 = vmax.f32 %v451_v5, 0.0 }
  0xab   : > { %v485_v9 = vmax.f32 %v409_v7, 0.0  ;;  %1089 = vmatmul.msk.f32.gmra.mxu2 %vm527_vm1, %v502_v8 }
  0xad   : > { %1072 = vmatmul.msk.f32.gmra.mxu1 %vm527_vm1, %v485_v9 }
  0xae   : > { %v453_v10 = vpop.f32.mrf.mxu3 }
  0xaf   : > { %v454_v11 = vadd.f32 %v1446_v55, %v453_v10 }
  0xb0   : > { %v410_v12 = vpop.f32.mrf.mxu0 }
  0xb1   : > { %v411_v13 = vadd.f32 %v1446_v55, %v410_v12  ;;  %v503_v14 = vmax.f32 %v454_v11, 0.0 }
  0xb3   : > { %v486_v15 = vmax.f32 %v411_v13, 0.0  ;;  %1090 = vmatmul.msk.f32.gmra.mxu2 %vm527_vm1, %v503_v14 }
  0xb5   : > { %1073 = vmatmul.msk.f32.gmra.mxu1 %vm527_vm1, %v486_v15 }
  0xb6   : > { %v455_v16 = vpop.f32.mrf.mxu3 }
  0xb7   : > { %v456_v17 = vadd.f32 %v1446_v55, %v455_v16 }
  0xb8   : > { %v413_v18 = vpop.f32.mrf.mxu0 }
  0xb9   : > { %v414_v19 = vadd.f32 %v1446_v55, %v413_v18  ;;  %v504_v20 = vmax.f32 %v456_v17, 0.0 }
  0xbb   : > { %v487_v21 = vmax.f32 %v414_v19, 0.0  ;;  %1091 = vmatmul.msk.f32.gmra.mxu2 %vm527_vm1, %v504_v20 }
  0xbd   : > { %1074 = vmatmul.msk.f32.gmra.mxu1 %vm527_vm1, %v487_v21 }
  0xbe   : > { %v458_v22 = vpop.f32.mrf.mxu3 }
  0xbf   : > { %v459_v23 = vadd.f32 %v1446_v55, %v458_v22  ;;  %v1514_v22 = vld [vmem:[%s1692_s4] ss:$0 sm:$0xff] }
  0xc0   : > { %v415_v24 = vpop.f32.mrf.mxu0 }
  0xc1   : > { %v416_v25 = vadd.f32 %v1446_v55, %v415_v24  ;;  %v505_v26 = vmax.f32 %v459_v23, 0.0 }
  0xc3   : > { %v488_v27 = vmax.f32 %v416_v25, 0.0  ;;  %1092 = vmatmul.msk.f32.gmra.mxu2 %vm527_vm1, %v505_v26 }
  0xc5   : > { %1075 = vmatmul.msk.f32.gmra.mxu1 %vm527_vm1, %v488_v27 }
  0xc6   : > { %v460_v28 = vpop.f32.mrf.mxu3 }
  0xc7   : > { %v461_v29 = vadd.f32 %v1446_v55, %v460_v28 }
  0xc8   : > { %v418_v30 = vpop.f32.mrf.mxu0 }
  0xc9   : > { %v419_v31 = vadd.f32 %v1446_v55, %v418_v30  ;;  %v506_v32 = vmax.f32 %v461_v29, 0.0 }
  0xcb   : > { %v489_v33 = vmax.f32 %v419_v31, 0.0  ;;  %1093 = vmatmul.msk.f32.gmra.mxu2 %vm527_vm1, %v506_v32 }
  0xcd   : > { %1076 = vmatmul.msk.f32.gmra.mxu1 %vm527_vm1, %v489_v33 }
  0xce   : > { %v463_v34 = vpop.f32.mrf.mxu3 }
  0xcf   : > { %v464_v35 = vadd.f32 %v1446_v55, %v463_v34 }
  0xd0   : > { %v420_v36 = vpop.f32.mrf.mxu0 }
  0xd1   : > { %v421_v37 = vadd.f32 %v1446_v55, %v420_v36  ;;  %v507_v38 = vmax.f32 %v464_v35, 0.0 }
  0xd3   : > { %v490_v39 = vmax.f32 %v421_v37, 0.0  ;;  %1094 = vmatmul.msk.f32.gmra.mxu2 %vm527_vm1, %v507_v38 }
  0xd5   : > { %1077 = vmatmul.msk.f32.gmra.mxu1 %vm527_vm1, %v490_v39 }
  0xd6   : > { %v465_v40 = vpop.f32.mrf.mxu3 }
  0xd7   : > { %v466_v41 = vadd.f32 %v1446_v55, %v465_v40 }
  0xd8   : > { %v423_v42 = vpop.f32.mrf.mxu0 }
  0xd9   : > { %v424_v43 = vadd.f32 %v1446_v55, %v423_v42  ;;  %v508_v44 = vmax.f32 %v466_v41, 0.0 }
  0xdb   : > { %v491_v45 = vmax.f32 %v424_v43, 0.0  ;;  %1095 = vmatmul.msk.f32.gmra.mxu2 %vm527_vm1, %v508_v44 }
  0xdd   : > { %1078 = vmatmul.msk.f32.gmra.mxu1 %vm527_vm1, %v491_v45 }
  0xde   : > { %v468_v46 = vpop.f32.mrf.mxu3 }
  0xdf   : > { %v469_v47 = vadd.f32 %v1446_v55, %v468_v46 }
  0xe0   : > { %v425_v48 = vpop.f32.mrf.mxu0 }
  0xe1   : > { %v426_v49 = vadd.f32 %v1446_v55, %v425_v48  ;;  %v509_v50 = vmax.f32 %v469_v47, 0.0 }
  0xe3   : > { %v492_v51 = vmax.f32 %v426_v49, 0.0  ;;  %1096 = vmatmul.msk.f32.gmra.mxu2 %vm527_vm1, %v509_v50 }
  0xe5   : > { %1079 = vmatmul.msk.f32.gmra.mxu1 %vm527_vm1, %v492_v51 }
  0xe6   : > { %v470_v52 = vpop.f32.mrf.mxu3 }
  0xe7   : > { %v471_v53 = vadd.f32 %v1446_v55, %v470_v52 }
  0xe8   : > { %v428_v54 = vpop.f32.mrf.mxu0 }
  0xe9   : > { %v429_v56 = vadd.f32 %v1446_v55, %v428_v54  ;;  %v510_v57 = vmax.f32 %v471_v53, 0.0 }
  0xeb   : > { %v493_v58 = vmax.f32 %v429_v56, 0.0  ;;  %1097 = vmatmul.msk.f32.gmra.mxu2 %vm527_vm1, %v510_v57 }
  0xed   : > { %1080 = vmatmul.msk.f32.gmra.mxu1 %vm527_vm1, %v493_v58 }
  0xee   : > { %v473_v59 = vpop.f32.mrf.mxu3 }
  0xef   : > { %v474_v60 = vadd.f32 %v1446_v55, %v473_v59 }
  0xf0   : > { %v430_v61 = vpop.f32.mrf.mxu0 }
  0xf1   : > { %v431_v62 = vadd.f32 %v1446_v55, %v430_v61  ;;  %v511_v63 = vmax.f32 %v474_v60, 0.0 }
  0xf3   : > { %v494_v0 = vmax.f32 %v431_v62, 0.0  ;;  %1098 = vmatmul.msk.f32.gmra.mxu2 %vm527_vm1, %v511_v63 }
  0xf5   : > { %1081 = vmatmul.msk.f32.gmra.mxu1 %vm527_vm1, %v494_v0 }
  0xf6   : > { %v475_v1 = vpop.f32.mrf.mxu3 }
  0xf7   : > { %v476_v2 = vadd.f32 %v1446_v55, %v475_v1 }
  0xf8   : > { %v433_v3 = vpop.f32.mrf.mxu0 }
  0xf9   : > { %v434_v4 = vadd.f32 %v1446_v55, %v433_v3  ;;  %v512_v5 = vmax.f32 %v476_v2, 0.0 }
  0xfb   : > { %v495_v6 = vmax.f32 %v434_v4, 0.0  ;;  %1099 = vmatmul.msk.f32.gmra.mxu2 %vm527_vm1, %v512_v5 }
  0xfd   : > { %1082 = vmatmul.msk.f32.gmra.mxu1 %vm527_vm1, %v495_v6 }
  0xfe   : > { %v478_v7 = vpop.f32.mrf.mxu3 }
  0xff   : > { %v479_v8 = vadd.f32 %v1446_v55, %v478_v7 }
 0x100   : > { %v435_v9 = vpop.f32.mrf.mxu0 }
 0x101   : > { %v436_v10 = vadd.f32 %v1446_v55, %v435_v9  ;;  %v513_v11 = vmax.f32 %v479_v8, 0.0 }
 0x103   : > { %v496_v12 = vmax.f32 %v436_v10, 0.0  ;;  %1100 = vmatmul.msk.f32.gmra.mxu2 %vm527_vm1, %v513_v11 }
 0x105   : > { %1083 = vmatmul.msk.f32.gmra.mxu1 %vm527_vm1, %v496_v12 }
 0x106   : > { %v480_v13 = vpop.f32.mrf.mxu3 }
 0x107   : > { %v481_v14 = vadd.f32 %v1446_v55, %v480_v13 }
 0x108   : > { %v438_v15 = vpop.f32.mrf.mxu0 }
 0x109   : > { %v439_v16 = vadd.f32 %v1446_v55, %v438_v15  ;;  %v514_v17 = vmax.f32 %v481_v14, 0.0 }
 0x10b   : > { %v497_v18 = vmax.f32 %v439_v16, 0.0  ;;  %1101 = vmatmul.msk.f32.gmra.mxu2 %vm527_vm1, %v514_v17 }
 0x10d   : > { %1084 = vmatmul.msk.f32.gmra.mxu1 %vm527_vm1, %v497_v18 }
 0x110   : > { %v440_v19 = vpop.f32.mrf.mxu0 }
 0x111   : > { %v441_v20 = vadd.f32 %v1446_v55, %v440_v19 }
 0x113   : > { %v498_v21 = vmax.f32 %v441_v20, 0.0 }
 0x115   : > { %1085 = vmatmul.msk.f32.gmra.mxu1 %vm527_vm1, %v498_v21 }
 0x118   : > { %v443_v23 = vpop.f32.mrf.mxu0 }
 0x119   : > { %v444_v24 = vadd.f32 %v1446_v55, %v443_v23 }
 0x11a   : > { %v641_v25 = vpop.f32.mrf.mxu1 }
 0x11b   : > { %v1518_v26 = vadd.f32 %v1514_v22, %v641_v25  ;;  %v499_v27 = vmax.f32 %v444_v24, 0.0 }
 0x11d   : > { %1086 = vmatmul.msk.f32.gmra.mxu1 %vm527_vm1, %v499_v27 }
 0x120   : > { %v445_v28 = vpop.f32.mrf.mxu0 }
 0x121   : > { %v446_v29 = vadd.f32 %v1446_v55, %v445_v28 }
 0x122   : > { %v1522_v30 = vpop.f32.mrf.mxu1 }
 0x123   : > { %v500_v31 = vmax.f32 %v446_v29, 0.0 }
 0x125   : > { %1087 = vmatmul.msk.f32.gmra.mxu1 %vm527_vm1, %v500_v31 }
 0x126   : > { %v1525_v32 = vpop.f32.mrf.mxu2 }
 0x12a   : > { %v1527_v33 = vpop.f32.mrf.mxu1 }
 0x12e   : > { %v1529_v34 = vpop.f32.mrf.mxu2 }
 0x132   : > { %v1531_v35 = vpop.f32.mrf.mxu1 }
 0x136   : > { %v1533_v36 = vpop.f32.mrf.mxu2 }
 0x13a   : > { %v1535_v37 = vpop.f32.mrf.mxu1 }
 0x13e   : > { %v1537_v38 = vpop.f32.mrf.mxu2 }
 0x142   : > { %v1539_v55 = vpop.f32.mrf.mxu1 }
 0x146   : > { %v1541_v39 = vpop.f32.mrf.mxu2 }
 0x14a   : > { %v1543_v40 = vpop.f32.mrf.mxu1 }
 0x14e   : > { %v710_v41 = vpop.f32.mrf.mxu2 }
 0x14f   : > { %v711_v28 = vadd.f32 %v1514_v22, %v710_v41  ;;  %v660_v41 = vadd.f32 %v1514_v22, %v1543_v40 }
 0x152   : > { %v1545_v42 = vpop.f32.mrf.mxu1 }
 0x153   : > { %v663_v31 = vadd.f32 %v1514_v22, %v1545_v42  ;;  %v743_v42 = vmax.f32 %v660_v41, 0.0 }
 0x156   : > { %v713_v43 = vpop.f32.mrf.mxu2 }
 0x157   : > { %v714_v23 = vadd.f32 %v1514_v22, %v713_v43  ;;  %v708_v43 = vadd.f32 %v1514_v22, %v1541_v39  ;;  %v657_v39 = vadd.f32 %v1514_v22, %v1539_v55 }
 0x159   : > { %v761_v29 = vmax.f32 %v714_v23, 0.0  ;;  %v742_v40 = vmax.f32 %v657_v39, 0.0 }
 0x15a   : > { %v665_v44 = vpop.f32.mrf.mxu1 }
 0x15b   : > { %v666_v25 = vadd.f32 %v1514_v22, %v665_v44  ;;  %v744_v44 = vmax.f32 %v663_v31, 0.0 }
 0x15e   : > { %v716_v45 = vpop.f32.mrf.mxu2 }
 0x15f   : > { %v717_v18 = vadd.f32 %v1514_v22, %v716_v45  ;;  %v745_v45 = vmax.f32 %v666_v25, 0.0 }
 0x161   : > { %v762_v24 = vmax.f32 %v717_v18, 0.0 }
 0x162   : > { %v668_v46 = vpop.f32.mrf.mxu1 }
 0x163   : > { %v669_v20 = vadd.f32 %v1514_v22, %v668_v46  ;;  %v760_v46 = vmax.f32 %v711_v28, 0.0 }
 0x165   : > { %v746_v27 = vmax.f32 %v669_v20, 0.0 }
 0x166   : > { %v719_v47 = vpop.f32.mrf.mxu2 }
 0x167   : > { %v720_v14 = vadd.f32 %v1514_v22, %v719_v47  ;;  %v705_v47 = vadd.f32 %v1514_v22, %v1537_v38  ;;  %v654_v38 = vadd.f32 %v1514_v22, %v1535_v37 }
 0x169   : > { %v763_v19 = vmax.f32 %v720_v14, 0.0  ;;  %v741_v55 = vmax.f32 %v654_v38, 0.0 }
 0x16a   : > { %v671_v48 = vpop.f32.mrf.mxu1 }
 0x16b   : > { %v672_v16 = vadd.f32 %v1514_v22, %v671_v48  ;;  %v759_v48 = vmax.f32 %v708_v43, 0.0 }
 0x16d   : > { %v747_v21 = vmax.f32 %v672_v16, 0.0 }
 0x16e   : > { %v722_v49 = vpop.f32.mrf.mxu2 }
 0x16f   : > { %v723_v10 = vadd.f32 %v1514_v22, %v722_v49 }
 0x171   : > { %v764_v15 = vmax.f32 %v723_v10, 0.0 }
 0x172   : > { %v674_v50 = vpop.f32.mrf.mxu1 }
 0x173   : > { %v675_v12 = vadd.f32 %v1514_v22, %v674_v50  ;;  %v702_v50 = vadd.f32 %v1514_v22, %v1533_v36  ;;  %v651_v36 = vadd.f32 %v1514_v22, %v1531_v35 }
 0x175   : > { %v748_v17 = vmax.f32 %v675_v12, 0.0 }
 0x176   : > { %v725_v51 = vpop.f32.mrf.mxu2 }
 0x177   : > { %v726_v6 = vadd.f32 %v1514_v22, %v725_v51  ;;  %v758_v51 = vmax.f32 %v705_v47, 0.0 }
 0x179   : > { %v765_v11 = vmax.f32 %v726_v6, 0.0 }
 0x17a   : > { %v677_v52 = vpop.f32.mrf.mxu1 }
 0x17b   : > { %v678_v8 = vadd.f32 %v1514_v22, %v677_v52  ;;  %v699_v52 = vadd.f32 %v1514_v22, %v1529_v34  ;;  %v648_v34 = vadd.f32 %v1514_v22, %v1527_v33 }
 0x17d   : > { %v749_v13 = vmax.f32 %v678_v8, 0.0  ;;  %v739_v35 = vmax.f32 %v648_v34, 0.0 }
 0x17e   : > { %v728_v53 = vpop.f32.mrf.mxu2 }
 0x17f   : > { %v729_v2 = vadd.f32 %v1514_v22, %v728_v53  ;;  %v757_v53 = vmax.f32 %v702_v50, 0.0 }
 0x181   : > { %v766_v7 = vmax.f32 %v729_v2, 0.0 }
 0x182   : > { %v680_v54 = vpop.f32.mrf.mxu1 }
 0x183   : > { %v681_v4 = vadd.f32 %v1514_v22, %v680_v54  ;;  %v696_v54 = vadd.f32 %v1514_v22, %v1525_v32  ;;  %v645_v32 = vadd.f32 %v1514_v22, %v1522_v30  ;;  %v737_v30 = vmax.f32 %v1518_v26, 0.0 }
 0x185   : > { %v750_v9 = vmax.f32 %v681_v4, 0.0  ;;  %v738_v33 = vmax.f32 %v645_v32, 0.0 }
 0x186   : > { %v731_v56 = vpop.f32.mrf.mxu2 }
 0x187   : > { %v732_v60 = vadd.f32 %v1514_v22, %v731_v56  ;;  %v756_v56 = vmax.f32 %v699_v52, 0.0 }
 0x189   : > { %v767_v3 = vmax.f32 %v732_v60, 0.0 }
 0x18a   : > { %v683_v57 = vpop.f32.mrf.mxu1 }
 0x18b   : > { %v684_v0 = vadd.f32 %v1514_v22, %v683_v57  ;;  %v740_v57 = vmax.f32 %v651_v36, 0.0 }
 0x18d   : > { %v751_v5 = vmax.f32 %v684_v0, 0.0 }
 0x18e   : > { %v734_v58 = vpop.f32.mrf.mxu2 }
 0x18f   : > { %v735_v59 = vadd.f32 %v1514_v22, %v734_v58  ;;  %v755_v58 = vmax.f32 %v696_v54, 0.0 }
 0x191   : > { %v768_v61 = vmax.f32 %v735_v59, 0.0 }
 0x192   : > { %v686_v62 = vpop.f32.mrf.mxu1 }
 0x193   : > { %v687_v63 = vadd.f32 %v1514_v22, %v686_v62  ;;  %1119 = vmatpush.xpose.msk.msrb.mxu3 %vm770_vm2, %v768_v61 }
 0x195   : > { %v752_v1 = vmax.f32 %v687_v63, 0.0  ;;  %v769_v63 = vld [vmem:[%s1693_s5] sm:$0x1] }
 0x197   : > { %1102 = vmatpush.xpose.msk.msrb.mxu2 %vm770_vm2, %v752_v1  ;;  %1120 = vmatpush.xpose.msk.msrb.mxu3 %vm770_vm2, %v767_v3 }
 0x19a   : > { %v689_v49 = vpop.f32.mrf.mxu1 }
 0x19b   : > { %1103 = vmatpush.xpose.msk.msrb.mxu2 %vm770_vm2, %v751_v5  ;;  %1121 = vmatpush.xpose.msk.msrb.mxu3 %vm770_vm2, %v766_v7  ;;  %v690_v60 = vadd.f32 %v1514_v22, %v689_v49 }
 0x19d   : > { %v753_v62 = vmax.f32 %v690_v60, 0.0 }
 0x19f   : > { %1104 = vmatpush.xpose.msk.msrb.mxu2 %vm770_vm2, %v750_v9  ;;  %1122 = vmatpush.xpose.msk.msrb.mxu3 %vm770_vm2, %v765_v11 }
 0x1a2   : > { %v692_v37 = vpop.f32.mrf.mxu1 }
 0x1a3   : > { %1105 = vmatpush.xpose.msk.msrb.mxu2 %vm770_vm2, %v749_v13  ;;  %1123 = vmatpush.xpose.msk.msrb.mxu3 %vm770_vm2, %v764_v15  ;;  %v693_v59 = vadd.f32 %v1514_v22, %v692_v37 }
 0x1a5   : > { %v754_v61 = vmax.f32 %v693_v59, 0.0 }
 0x1a7   : > { %1106 = vmatpush.xpose.msk.msrb.mxu2 %vm770_vm2, %v748_v17  ;;  %1124 = vmatpush.xpose.msk.msrb.mxu3 %vm770_vm2, %v763_v19  ;;  %v954_v17 = vlaneseq }
 0x1a9   : > { %vm956_vm12 = vcmp.lt.s32.totalorder %v954_v17, 256 }
 0x1ab   : > { %1107 = vmatpush.xpose.msk.msrb.mxu2 %vm770_vm2, %v747_v21  ;;  %1125 = vmatpush.xpose.msk.msrb.mxu3 %vm770_vm2, %v762_v24 }
 0x1af   : > { %1108 = vmatpush.xpose.msk.msrb.mxu2 %vm770_vm2, %v746_v27  ;;  %1126 = vmatpush.xpose.msk.msrb.mxu3 %vm770_vm2, %v761_v29 }
 0x1b3   : > { %1109 = vmatpush.xpose.msk.msrb.mxu2 %vm770_vm2, %v745_v45  ;;  %1127 = vmatpush.xpose.msk.msrb.mxu3 %vm770_vm2, %v760_v46 }
 0x1b7   : > { %1110 = vmatpush.xpose.msk.msrb.mxu2 %vm770_vm2, %v744_v44  ;;  %1128 = vmatpush.xpose.msk.msrb.mxu3 %vm770_vm2, %v759_v48 }
 0x1bb   : > { %1111 = vmatpush.xpose.msk.msrb.mxu2 %vm770_vm2, %v743_v42  ;;  %1129 = vmatpush.xpose.msk.msrb.mxu3 %vm770_vm2, %v758_v51 }
 0x1bf   : > { %1112 = vmatpush.xpose.msk.msrb.mxu2 %vm770_vm2, %v742_v40  ;;  %1130 = vmatpush.xpose.msk.msrb.mxu3 %vm770_vm2, %v757_v53 }
 0x1c3   : > { %1113 = vmatpush.xpose.msk.msrb.mxu2 %vm770_vm2, %v741_v55  ;;  %1131 = vmatpush.xpose.msk.msrb.mxu3 %vm770_vm2, %v756_v56 }
 0x1c7   : > { %1114 = vmatpush.xpose.msk.msrb.mxu2 %vm770_vm2, %v740_v57  ;;  %1132 = vmatpush.xpose.msk.msrb.mxu3 %vm770_vm2, %v755_v58 }
 0x1cb   : > { %1115 = vmatpush.xpose.msk.msrb.mxu2 %vm770_vm2, %v739_v35  ;;  %1133 = vmatpush.xpose.msk.msrb.mxu3 %vm770_vm2, %v754_v61 }
 0x1cf   : > { %1116 = vmatpush.xpose.msk.msrb.mxu2 %vm770_vm2, %v738_v33  ;;  %1134 = vmatpush.xpose.msk.msrb.mxu3 %vm770_vm2, %v753_v62 }
 0x1d2   : > { %1135 = vmatmul.msk.f32.vlgmr.msrb.gmra.mxu3 %vm770_vm2, %v769_v63 }
 0x1d3   : > { %1117 = vmatpush.xpose.msk.msrb.mxu2 %vm770_vm2, %v737_v30 }
 0x1d6   : > { %1118 = vmatmul.msk.f32.vlgmr.msrb.gmra.mxu2 %vm770_vm2, %v769_v63 }
 0x255   : > { %v907_v22 = vpop.f32.mrf.mxu3 }
 0x256   : > { %v1137_v0 = vmul.f32 -1.442695, %v907_v22 }
 0x258   : > { %1195 = vpow2.f32 %v1137_v0 }
 0x259   : > { %v887_v1 = vpop.f32.mrf.mxu2 }
 0x25a   : > { %v1136_v2 = vmul.f32 -1.442695, %v887_v1 }
 0x25c   : > { %1197 = vpow2.f32 %v1136_v2 }
 0x25e   : > { %v1196_v3 = vpop.eup %1195 }
 0x25f   : > { %v917_v4 = vadd.f32 1.0, %v1196_v3 }
 0x261   : > { %1199 = vrcp.f32 %v917_v4  ;;  %v944_v10 = vand.u32 2147483648, %v917_v4  ;;  %v942_v13 = vand.u32 2147483647, %v917_v4  ;;  %vm938_vm4 = vweird.f32 %v917_v4 }
 0x262   : > { %v1198_v5 = vpop.eup %1197 }
 0x263   : > { %v916_v6 = vadd.f32 1.0, %v1198_v5  ;;  %v945_v18 = vor.u32 1.1754944e-38, %v944_v10  ;;  %vm943_vm7 = vcmp.eq.f32.partialorder %v942_v13, 8.507059e+37 }
 0x265   : > { %1201 = vrcp.f32 %v916_v6  ;;  %v929_v16 = vand.u32 2147483648, %v916_v6  ;;  %v927_v20 = vand.u32 2147483647, %v916_v6  ;;  %vm923_vm8 = vweird.f32 %v916_v6 }
 0x267   : > { %v1200_v26 = vpop.eup %1199  ;;  %v930_v25 = vor.u32 1.1754944e-38, %v929_v16  ;;  %vm928_vm11 = vcmp.eq.f32.partialorder %v927_v20, 8.507059e+37 }
 0x268   : > { %v934_v7 = vmul.f32 %v1200_v26, %v917_v4  ;;  %vm939_vm3 = vweird.f32 %v1200_v26 }
 0x269   : > { %vm940_vm5 = vmor %vm938_vm4, %vm939_vm3 }
 0x26a   : > { %v935_v9 = vsub.f32 1.0, %v934_v7 }
 0x26b   : > { %v1202_v8 = vpop.eup %1201 }
 0x26c   : > { %v919_v11 = vmul.f32 %v1202_v8, %v916_v6  ;;  %v936_v12 = vmul.f32 %v1200_v26, %v935_v9  ;;  %vm924_vm6 = vweird.f32 %v1202_v8 }
 0x26d   : > { %vm925_vm9 = vmor %vm923_vm8, %vm924_vm6 }
 0x26e   : > { %v920_v14 = vsub.f32 1.0, %v919_v11  ;;  %v937_v15 = vadd.f32 %v1200_v26, %v936_v12 }
 0x270   : > { %v921_v19 = vmul.f32 %v1202_v8, %v920_v14  ;;  %v941_v21 = vsel %vm940_vm5, %v1200_v26, %v937_v15 }
 0x271   : > { %v946_v23 = vsel %vm943_vm7, %v945_v18, %v941_v21 }
 0x272   : > { %v922_v24 = vadd.f32 %v1202_v8, %v921_v19  ;;  %v950_v27 = vrot.slane %v946_v23, 7 }
 0x273   : > { %966 = sbr.rel (!%p1352_p5) target bundleno = 661 (0x295), region = 48 }
 0x274   : > { %v926_v28 = vsel %vm925_vm9, %v1202_v8, %v922_v24 }
 0x275   : > { %v931_v29 = vsel %vm928_vm11, %v930_v25, %v926_v28 }
 0x276   : > { %v952_v31 = vsel %vm951_vm10, %v931_v29, %v950_v27 }
 0x277   : > { %958 = vst.msk [vmem:[%s257_s12] sm:$0x3] %vm956_vm12, %v952_v31 }
 0x278   : > { %s1704_s15 = smov (!%p969_p11, %s968_s15), 2 }
 0x279   : > { %s971_s16 = ssub.s32 2, %s1704_s15 }
 0x27a   : > { %s972_s18 = sshll.u32 %s971_s16, 4 }
 0x27b   : > { %973 = vsyncadd %s1633_s13, %s972_s18  ;;  %p1140_p12 = scmp.ne.s32.totalorder %s1704_s15, 0  ;;  %s975_s7 = scalar_lea.hbm %s1694_s6, %s1139_s14 }
 0x27c   : > { %s976_s26 = sshll.u32 %s1704_s15, 4  ;;  %s1647_s17 = sshll.u32 %s257_s12, 4  ;;  %s978_s17 = int_to_ptr.vmem [resolvable:$true] %s1647_s17 }
 0x27d   : > { %s979_s25 = sshll.u32 %s975_s7, 4  ;;  %s1203_s28 = sshra.s32 %s978_s17, 4  ;;  %s980_s25 = int_to_ptr.hbm [resolvable:$true] %s979_s25  ;;  %s1204_s28 = int_to_ptr.vmem [resolvable:$true] %s1203_s28 }
 0x27e   : > { %s1205_s29 = sshrl.u32 %s976_s26, 4  ;;  %s1278_s10 = smov [#allocation2]  }
 0x27f   : > { %s1210_s9 = scalar_lea.vmem %s1204_s28, %s1205_s29  ;;  %s1214_s11 = scalar_lea.vmem %s1278_s10, 4 }
 0x280   : > { %p1211_p13 = scmp.ne.s32.totalorder %s1204_s28, %s1210_s9  ;;  %p1216_p2 = scmp.lt.s32.totalorder %s1214_s11, %s1210_s9 }
 0x282   : > { %p1212_p0 = pnand %p1211_p13, %p1140_p12 }
 0x284   : > { %p1213_p1 = pneg %p1212_p0 }
 0x286   : > { %p1218_p3 = pnand %p1216_p2, %p1213_p1 }
 0x288   : > { %1221 = shalt.err (!%p1218_p3)
}
 0x289   : > { %s1222_s12 = sshra.s32 %s980_s25, 4  ;;  %s1233_s19 = scalar_lea.hbm %s1694_s6, 3  ;;  %s1223_s12 = int_to_ptr.hbm [resolvable:$true] %s1222_s12 }
 0x28a   : > { %s1229_s14 = scalar_lea.hbm %s1223_s12, %s1205_s29  ;;  %p1234_p8 = scmp.lt.s32.totalorder %s1223_s12, %s1694_s6 }
 0x28b   : > { %p1230_p4 = scmp.ne.s32.totalorder %s1223_s12, %s1229_s14  ;;  %p1235_p9 = scmp.lt.s32.totalorder %s1233_s19, %s1229_s14 }
 0x28d   : > { %p1231_p5 = pnand %p1230_p4, %p1140_p12  ;;  %p1236_p10 = por %p1235_p9, %p1234_p8 }
 0x28f   : > { %p1232_p7 = pneg %p1231_p5 }
 0x291   : > { %p1237_p11 = pnand %p1236_p10, %p1232_p7 }
 0x293   : > { %1240 = shalt.err (!%p1237_p11)
}
 0x294   : > { %982 = dma.vmem_to_hbm [thread:$0]  (%p1140_p12), %s978_s17, %s976_s26, %s980_s25, %s1633_s13  }
 0x295 PF: > { %p1160_p13 = scmp.ge.s32.totalorder %s1276_s24, 2  ;;  %s991_s28 = sand.u32 1, %s1264_s21  }
 0x296   : > { %s992_s29 = scalar_lea.sflag [#allocation3], %s991_s28 }
 0x297   : > { %p1157_p0 = pnand %p1160_p13, %p1356_p6 }
 0x299   : > { %p1158_p1 = pneg %p1157_p0 }
 0x29b   : > { %1259 = dma.done.wait (%p1158_p1), %s992_s29, 32  }
 0x29c   : > { %1261 = vsyncadd (%p1158_p1), %s992_s29, 4294967264  ;;  %p16_p2 = scmp.ge.s32.totalorder %s1339_s27, 4   ;;  %s1697_s21 = smov %s1268_s22 }
 0x29d   : > { %s1698_s22 = smov %s1272_s23  ;;  %s1699_s23 = smov %s1350_s30 }
 0x29e   : > { %s1700_s24 = smov %s1339_s27  ;;  %18 = sbr.rel (!%p16_p2) target bundleno = 3 (0x3), region = 79 }
 0x2a3   :  { %998 = vsyncpa [#allocation3], 1 }
 0x2a4   :  { %1000 = vsyncpa [#allocation3 + $0x1], 1 }

</bundles_post_ra>
